<compile_context>
chip_gen: v7x
topology: tpu7x:2x2x1
jax: 0.10.0
libtpu: 0.0.40
codegen_flags: <defaults>
</compile_context>

<pallas_src>
import jax
import jax.numpy as jnp
from jax.experimental import pallas as pl
from jax.experimental.pallas import tpu as pltpu


def state_predictor_kernel(x_ref, w1sa_ref, w1a_ref, b1_ref, w2_ref, b2_ref,
                           out_ref):
    x = x_ref[...]                                  # (TB, S+1) f32
    TB, Sp1 = x.shape
    S = Sp1 - 1
    A = w1a_ref.shape[0]

    # One-hot(action) via a VPU compare; action rides in the last column of x.
    action = x[:, S:S + 1].astype(jnp.int32)        # (TB, 1)
    col_ids = jax.lax.broadcasted_iota(jnp.int32, (TB, A), dimension=1)
    one_hot = (col_ids == action).astype(jnp.bfloat16)   # exact 0/1

    # First Linear (split, no concat): x_aug @ W1_sa + one_hot @ W1_a + b1.
    # Row S of W1_sa is zero, so the action column contributes nothing here.
    h = jnp.dot(x.astype(jnp.bfloat16), w1sa_ref[...],
                preferred_element_type=jnp.float32)
    h = h + jnp.dot(one_hot, w1a_ref[...], preferred_element_type=jnp.float32)
    h = jnp.maximum(h + b1_ref[...], 0.0)           # (TB, HP) f32

    # Second Linear -> narrow (TB, S) result; only the store is narrow.
    y = jnp.dot(h.astype(jnp.bfloat16), w2_ref[...],
                preferred_element_type=jnp.float32) + b2_ref[...]
    out_ref[...] = y.astype(out_ref.dtype)          # (TB, S)


def _round_up(x, m):
    return ((x + m - 1) // m) * m


def prepare_params(w1, b1, w2, b2, num_state):
    """One-time weight prep: split / pad / cast. Do NOT call per forward."""
    S = num_state
    H = w1.shape[1]
    A = w1.shape[0] - S
    HP = _round_up(H, 128)                          # lane-dense hidden dim

    # W1 rows for state features, plus one extra zero row for the folded
    # action-index column of x_aug.
    w1sa = jnp.zeros((S + 1, HP), jnp.bfloat16).at[:S, :H].set(
        w1[:S].astype(jnp.bfloat16))
    w1a = jnp.zeros((A, HP), jnp.bfloat16).at[:, :H].set(
        w1[S:].astype(jnp.bfloat16))
    b1p = jnp.zeros((1, HP), jnp.float32).at[:, :H].set(
        b1.reshape(1, H).astype(jnp.float32))
    w2p = jnp.zeros((HP, S), jnp.bfloat16).at[:H, :].set(
        w2.astype(jnp.bfloat16))
    b2p = b2.reshape(1, S).astype(jnp.float32)
    return w1sa, w1a, b1p, w2p, b2p


def state_predictor(state, action, params, *, block_b=4096):
    """Forward pass. `params` comes from prepare_params()."""
    w1sa, w1a, b1p, w2p, b2p = params
    B, S = state.shape
    A = w1a.shape[0]
    HP = w1sa.shape[1]

    # Fold the action index into the state tile as one extra f32 column.
    x_aug = jnp.concatenate(
        [state.astype(jnp.float32),
         action.reshape(B, 1).astype(jnp.float32)], axis=1)      # (B, S+1)

    # Batch tile: whole batch if it fits, else pipeline block_b-row tiles
    # (block_b is a multiple of 8 so tail tiles stay sublane-aligned).
    TB = B if B <= block_b else block_b
    grid = (pl.cdiv(B, TB),)

    out = pl.pallas_call(
        state_predictor_kernel,
        out_shape=jax.ShapeDtypeStruct((B, S), state.dtype),     # narrow output
        grid_spec=pltpu.PrefetchScalarGridSpec(
            num_scalar_prefetch=0,
            grid=grid,
            in_specs=[
                pl.BlockSpec((TB, S + 1), lambda i: (i, 0)),     # x_aug tile
                pl.BlockSpec((S + 1, HP), lambda i: (0, 0)),     # W1_sa (resident)
                pl.BlockSpec((A, HP), lambda i: (0, 0)),         # W1_a  (resident)
                pl.BlockSpec((1, HP), lambda i: (0, 0)),         # b1    (resident)
                pl.BlockSpec((HP, S), lambda i: (0, 0)),         # W2    (resident)
                pl.BlockSpec((1, S), lambda i: (0, 0)),          # b2    (resident)
            ],
            out_specs=pl.BlockSpec((TB, S), lambda i: (i, 0)),   # narrow store
        ),
        compiler_params=pltpu.CompilerParams(
            dimension_semantics=("parallel",),       # dual-TC sharding on v7x
            vmem_limit_bytes=32 * 1024 * 1024,       # safe on v5e/v6e/v7x
        ),
    )(x_aug, w1sa, w1a, b1p, w2p, b2p)

    return out


def init_params(key, num_state, num_action, num_hidden):
    k1, k2, k3, k4 = jax.random.split(key, 4)
    in1 = num_state + num_action
    # deterministic uniform init matching torch.nn.Linear bounds (synthetic weights)
    lim1 = 1.0 / jnp.sqrt(in1)
    lim2 = 1.0 / jnp.sqrt(num_hidden)
    w1 = jax.random.uniform(k1, (in1, num_hidden), jnp.float32, -lim1, lim1)
    b1 = jax.random.uniform(k2, (1, num_hidden), jnp.float32, -lim1, lim1)
    w2 = jax.random.uniform(k3, (num_hidden, num_state), jnp.float32, -lim2, lim2)
    b2 = jax.random.uniform(k4, (1, num_state), jnp.float32, -lim2, lim2)
    return w1, b1, w2, b2


def reference(state, action, w1, b1, w2, b2):
    # pure-JAX f32 reference of the PyTorch forward
    one_hot = jax.nn.one_hot(action, w1.shape[0] - state.shape[1], dtype=state.dtype)
    x = jnp.concatenate([state, one_hot], axis=1)
    h = jnp.maximum(x @ w1 + b1, 0.0)
    return h @ w2 + b2


if __name__ == "__main__":
    num_state, num_action, num_hidden = 16, 8, 32
    batch = 8

    key = jax.random.PRNGKey(0)
    k_state, k_action, k_params = jax.random.split(key, 3)

    state = jax.random.normal(k_state, (batch, num_state), jnp.float32)
    action = jax.random.randint(k_action, (batch,), 0, num_action, jnp.int32)
    w1, b1, w2, b2 = init_params(k_params, num_state, num_action, num_hidden)

    params = prepare_params(w1, b1, w2, b2, num_state)   # one-time weight prep
    out = state_predictor(state, action, params)
    out = jax.block_until_ready(out)

    ref = reference(state, action, w1, b1, w2, b2)
    assert out.shape == (batch, num_state)
    # bf16 MXU operands with f32 accumulation -> relaxed tolerance
    assert jnp.allclose(out, ref, atol=2e-2, rtol=2e-2), "mismatch vs reference"

    print("KERNEL_OK")
</pallas_src>

<mosaic_0001>
module attributes {stable_mosaic.version = 11 : i64} {
  func.func @state_predictor_kernel(%arg0: i32, %arg1: memref<8x17xf32, #tpu.memory_space<vmem>>, %arg2: memref<17x128xbf16, #tpu.memory_space<vmem>>, %arg3: memref<8x128xbf16, #tpu.memory_space<vmem>>, %arg4: memref<1x128xf32, #tpu.memory_space<vmem>>, %arg5: memref<128x16xbf16, #tpu.memory_space<vmem>>, %arg6: memref<1x16xf32, #tpu.memory_space<vmem>>, %arg7: memref<8x16xf32, #tpu.memory_space<vmem>>) attributes {dimension_semantics = [#tpu.dimension_semantics<parallel>], iteration_bounds = array<i64: 1>, scalar_prefetch = 0 : i64, scratch_operands = 0 : i64, tpu.core_type = #tpu.core_type<tc>, window_params = [{transform_indices = @transform_0, window_bounds = array<i64: 8, 17>}, {pipeline_mode = #tpu.pipeline_mode<synchronous>, transform_indices = @transform_1, window_bounds = array<i64: 17, 128>}, {pipeline_mode = #tpu.pipeline_mode<synchronous>, transform_indices = @transform_2, window_bounds = array<i64: 8, 128>}, {pipeline_mode = #tpu.pipeline_mode<synchronous>, transform_indices = @transform_3, window_bounds = array<i64: 1, 128>}, {pipeline_mode = #tpu.pipeline_mode<synchronous>, transform_indices = @transform_4, window_bounds = array<i64: 128, 16>}, {pipeline_mode = #tpu.pipeline_mode<synchronous>, transform_indices = @transform_5, window_bounds = array<i64: 1, 16>}, {transform_indices = @transform_6, window_bounds = array<i64: 8, 16>}]} {
    %c0 = arith.constant 0 : index
    %c0_0 = arith.constant 0 : index
    %0 = vector.load %arg1[%c0, %c0_0] : memref<8x17xf32, #tpu.memory_space<vmem>>, vector<8x17xf32>
    %1 = vector.extract_strided_slice %0 {offsets = [0, 16], sizes = [8, 1], strides = [1, 1]} : vector<8x17xf32> to vector<8x1xf32>
    %2 = arith.fptosi %1 : vector<8x1xf32> to vector<8x1xi32>
    %3 = tpu.iota {dimensions = array<i32: 1>} : vector<8x8xi32>
    %4 = vector.broadcast %2 : vector<8x1xi32> to vector<8x8xi32>
    %5 = arith.cmpi eq, %3, %4 : vector<8x8xi32>
    %6 = arith.extui %5 : vector<8x8xi1> to vector<8x8xi32>
    %7 = arith.sitofp %6 : vector<8x8xi32> to vector<8x8xf32>
    %8 = arith.truncf %7 : vector<8x8xf32> to vector<8x8xbf16>
    %9 = arith.truncf %0 : vector<8x17xf32> to vector<8x17xbf16>
    %c0_1 = arith.constant 0 : index
    %c0_2 = arith.constant 0 : index
    %10 = vector.load %arg2[%c0_1, %c0_2] : memref<17x128xbf16, #tpu.memory_space<vmem>>, vector<17x128xbf16>
    %cst = arith.constant dense<0.000000e+00> : vector<8x128xf32>
    %11 = tpu.matmul %9, %10, %cst {dimension_numbers = #tpu.dot_dimension_numbers<[1], [0], [0], [1], [0, 0, 1, 1], [], []>} : vector<8x17xbf16>, vector<17x128xbf16>, vector<8x128xf32> -> vector<8x128xf32>
    %c0_3 = arith.constant 0 : index
    %c0_4 = arith.constant 0 : index
    %12 = vector.load %arg3[%c0_3, %c0_4] : memref<8x128xbf16, #tpu.memory_space<vmem>>, vector<8x128xbf16>
    %cst_5 = arith.constant dense<0.000000e+00> : vector<8x128xf32>
    %13 = tpu.matmul %8, %12, %cst_5 {dimension_numbers = #tpu.dot_dimension_numbers<[1], [0], [0], [1], [0, 0, 1, 1], [], []>} : vector<8x8xbf16>, vector<8x128xbf16>, vector<8x128xf32> -> vector<8x128xf32>
    %14 = arith.addf %11, %13 : vector<8x128xf32>
    %c0_6 = arith.constant 0 : index
    %c0_7 = arith.constant 0 : index
    %15 = vector.load %arg4[%c0_6, %c0_7] : memref<1x128xf32, #tpu.memory_space<vmem>>, vector<1x128xf32>
    %16 = vector.broadcast %15 : vector<1x128xf32> to vector<8x128xf32>
    %17 = arith.addf %14, %16 : vector<8x128xf32>
    %cst_8 = arith.constant 0.000000e+00 : f32
    %18 = vector.broadcast %cst_8 : f32 to vector<8x128xf32>
    %19 = arith.maximumf %17, %18 : vector<8x128xf32>
    %20 = arith.truncf %19 : vector<8x128xf32> to vector<8x128xbf16>
    %c0_9 = arith.constant 0 : index
    %c0_10 = arith.constant 0 : index
    %21 = vector.load %arg5[%c0_9, %c0_10] : memref<128x16xbf16, #tpu.memory_space<vmem>>, vector<128x16xbf16>
    %cst_11 = arith.constant dense<0.000000e+00> : vector<8x16xf32>
    %22 = tpu.matmul %20, %21, %cst_11 {dimension_numbers = #tpu.dot_dimension_numbers<[1], [0], [0], [1], [0, 0, 1, 1], [], []>} : vector<8x128xbf16>, vector<128x16xbf16>, vector<8x16xf32> -> vector<8x16xf32>
    %c0_12 = arith.constant 0 : index
    %c0_13 = arith.constant 0 : index
    %23 = vector.load %arg6[%c0_12, %c0_13] : memref<1x16xf32, #tpu.memory_space<vmem>>, vector<1x16xf32>
    %24 = vector.broadcast %23 : vector<1x16xf32> to vector<8x16xf32>
    %25 = arith.addf %22, %24 : vector<8x16xf32>
    %c0_14 = arith.constant 0 : index
    %c0_15 = arith.constant 0 : index
    %26 = vector.load %arg7[%c0_14, %c0_15] : memref<8x16xf32, #tpu.memory_space<vmem>>, vector<8x16xf32>
    tpu.vector_store %arg7[%c0_14, %c0_15], %25 {strides = array<i32>} : memref<8x16xf32, #tpu.memory_space<vmem>>, vector<8x16xf32>,
    return
  }
  func.func @transform_0(%arg0: i32) -> (i32, i32) {
    %c0_i32 = arith.constant 0 : i32
    %c0_i32_0 = arith.constant 0 : i32
    return %arg0, %c0_i32 : i32, i32
  }
  func.func @transform_1(%arg0: i32) -> (i32, i32) {
    %c0_i32 = arith.constant 0 : i32
    %c0_i32_0 = arith.constant 0 : i32
    %c0_i32_1 = arith.constant 0 : i32
    return %c0_i32, %c0_i32_0 : i32, i32
  }
  func.func @transform_2(%arg0: i32) -> (i32, i32) {
    %c0_i32 = arith.constant 0 : i32
    %c0_i32_0 = arith.constant 0 : i32
    %c0_i32_1 = arith.constant 0 : i32
    return %c0_i32, %c0_i32_0 : i32, i32
  }
  func.func @transform_3(%arg0: i32) -> (i32, i32) {
    %c0_i32 = arith.constant 0 : i32
    %c0_i32_0 = arith.constant 0 : i32
    %c0_i32_1 = arith.constant 0 : i32
    return %c0_i32, %c0_i32_0 : i32, i32
  }
  func.func @transform_4(%arg0: i32) -> (i32, i32) {
    %c0_i32 = arith.constant 0 : i32
    %c0_i32_0 = arith.constant 0 : i32
    %c0_i32_1 = arith.constant 0 : i32
    return %c0_i32, %c0_i32_0 : i32, i32
  }
  func.func @transform_5(%arg0: i32) -> (i32, i32) {
    %c0_i32 = arith.constant 0 : i32
    %c0_i32_0 = arith.constant 0 : i32
    %c0_i32_1 = arith.constant 0 : i32
    return %c0_i32, %c0_i32_0 : i32, i32
  }
  func.func @transform_6(%arg0: i32) -> (i32, i32) {
    %c0_i32 = arith.constant 0 : i32
    %c0_i32_0 = arith.constant 0 : i32
    return %arg0, %c0_i32 : i32, i32
  }
}

</mosaic_0001>

<bundles_post_ra>
// kernel: tpu_custom_call.1
= control target key start
LH: loop header
LB: loop body
LE: loop exit
PB: predicated region body
PF: predicated region fallthrough
CT: control target
= control target key end

     0   :  { %v390_v1 = vmov 16   ;;  %v391_v3 = vmov 0.0   ;;  %vm45_vm0 = vcmask 1043456   ;;  %vm392_vm1 = vmmov 0   ;;  %s487_s0 = inlined_call_operand.vmem [shape: f32[8,17], index: 0, kind: input, shape index: {}]   ;;  %s488_s1 = inlined_call_operand.vmem [shape: bf16[17,128], index: 1, kind: input, shape index: {}]   ;;  %s489_s2 = inlined_call_operand.vmem [shape: bf16[8,128], index: 2, kind: input, shape index: {}]   ;;  %s490_s3 = inlined_call_operand.vmem [shape: f32[1,128], index: 3, kind: input, shape index: {}]   ;;  %s491_s4 = inlined_call_operand.vmem [shape: bf16[128,16], index: 4, kind: input, shape index: {}]   ;;  %s492_s5 = inlined_call_operand.vmem [shape: f32[1,16], index: 5, kind: input, shape index: {}]   ;;  %s493_s6 = inlined_call_operand.hbm [shape: f32[8,16], index: 6, kind: output, shape index: {}]  }
   0x1   :  { %v25_v0 = vld [vmem:[%s487_s0] sm:$0xff]  ;;  %355 = vset.pattern.permute.xlu0 %v390_v1  ;;  %314 = vmatprep.subr.bf16.mxu1 %v391_v3 }
   0x2   :  { %v348_v2 = vtrunc.f32 %v25_v0  ;;  %328 = vmatprep.subr.bf16.mxu0 %v391_v3  ;;  %v40_v5 = vld [vmem:[%s489_s2] sm:$0xf]  ;;  %316 = vmatprep.mubr.msk.bf16.mxu1 %vm392_vm1, %v391_v3 }
   0x3   :  { %v47_v6 = vsel %vm45_vm0, %v40_v5, 0  ;;  %344 = vmatprep.mubr.msk.bf16.mxu0 %vm392_vm1, %v391_v3 }
   0x4   :  { %v349_v4 = vcvt.f32.s32 %v348_v2  ;;  %315 = vmatpush3.bf16.msra.mxu1 %v47_v6 }
   0x5   :  { %320 = vmatprep.subr.bf16.mxu1 %v391_v3 }
   0x6   :  { %30 = vperm.xlu0 %355, %v349_v4  }
   0x7   :  { %11 = vsyncpa [#allocation3], 0  ;;  %v358_v7 = vld [vmem:[%s491_s4] sm:$0xff]   ;;  %v359_v8 = vld [vmem:[%s491_s4 + $0x8] sm:$0xff]   ;;  %v27_v11 = vlaneseq  ;;  %vm102_vm2 = vcmask 1040384   ;;  %vm41_vm4 = vcmask 64512   ;;  %v36_v21 = vpack.c.bf16 %v25_v0, %v25_v0 }
   0x8   :  { %329 = vmatpush3.bf16.msra.mxu0 %v358_v7  ;;  %v360_v9 = vld [vmem:[%s491_s4 + $0x10] sm:$0xff]   ;;  %v361_v10 = vld [vmem:[%s491_s4 + $0x18] sm:$0xff]   ;;  %v356_v15 = vld [vmem:[%s488_s1] sm:$0xff]   ;;  %v393_v18 = vmov 0   ;;  %vm98_vm5 = vcmask 138240   ;;  %s394_s21 = smov [#allocation2]  }
   0x9   :  { %330 = vmatprep.subr.bf16.mxu0 %v391_v3  ;;  %v28_v12 = vand.u32 127, %v27_v11  ;;  %v357_v16 = vld [vmem:[%s488_s1 + $0x8] ss:$0 sps:$4 sm:$0x11]   ;;  %v104_v19 = vsel %vm102_vm2, 65535, %v393_v18  ;;  %v362_v22 = vld [vmem:[%s491_s4 + $0x20] sm:$0xff]  }
   0xa   :  { %v106_v20 = vand.u32 %v357_v16, %v104_v19  ;;  %v363_v23 = vld [vmem:[%s491_s4 + $0x28] sm:$0xff]   ;;  %v364_v24 = vld [vmem:[%s491_s4 + $0x30] sm:$0xff]   ;;  %v365_v25 = vld [vmem:[%s491_s4 + $0x38] sm:$0xff]   ;;  %s277_s22 = sshll.u32 %s394_s21, 4  ;;  %vm269_vm6 = vcmask 130048   ;;  %s278_s22 = int_to_ptr.vmem [resolvable:$true] %s277_s22 }
   0xb   :  { %v290_v31 = vld [vmem:[%s490_s3] ss:$0 sm:$0xff]  ;;  %s366_s3 = scalar_lea.vmem %s278_s22, 128  ;;  %p371_p1 = scmp.lt.s32.totalorder %s278_s22, %s278_s22 }
   0xc   :  { %331 = vmatpush3.bf16.msra.mxu0 %v359_v8  ;;  %v291_v39 = vld [vmem:[%s492_s5] ss:$0 sm:$0xff]  ;;  %p367_p0 = scmp.ne.s32.totalorder %s278_s22, %s366_s3  ;;  %p372_p2 = scmp.lt.s32.totalorder %s366_s3, %s366_s3 }
   0xd   :  { %332 = vmatprep.subr.bf16.mxu0 %v391_v3 }
   0xe   :  { %p373_p3 = por %p372_p2, %p371_p1 }
  0x10   :  { %333 = vmatpush3.bf16.msra.mxu0 %v360_v9  ;;  %p374_p4 = pnand %p373_p3, %p367_p0 }
  0x11   :  { %334 = vmatprep.subr.bf16.mxu0 %v391_v3 }
  0x14   :  { %335 = vmatpush3.bf16.msra.mxu0 %v361_v10 }
  0x15   :  { %336 = vmatprep.subr.bf16.mxu0 %v391_v3 }
  0x18   :  { %337 = vmatpush3.bf16.msra.mxu0 %v362_v22 }
  0x19   :  { %338 = vmatprep.subr.bf16.mxu0 %v391_v3 }
  0x1c   :  { %339 = vmatpush3.bf16.msra.mxu0 %v363_v23 }
  0x1d   :  { %340 = vmatprep.subr.bf16.mxu0 %v391_v3 }
  0x20   :  { %341 = vmatpush3.bf16.msra.mxu0 %v364_v24 }
  0x21   :  { %342 = vmatprep.subr.bf16.mxu0 %v391_v3 }
  0x24   :  { %343 = vmatpush3.bf16.msra.mxu0 %v365_v25 }
  0x85   :  { %v31_v13 = vpop.permute.xlu0 %30 }
  0x86   :  { %vm32_vm3 = vcmp.eq.s32.totalorder %v28_v12, %v31_v13 }
  0x87   :  { %v285_v14 = vsel %vm32_vm3, 1.0, %v391_v3 }
  0x88   :  { %v35_v17 = vpack.c.bf16 %v285_v14, %v285_v14 }
  0x8a   :  { %317 = vmatmul.mubr.msk.bf16.vlgmr.msra.gmra.mrb[0].mxu1 %vm41_vm4, %v35_v17 }
  0x8b   :  { %321 = vmatpush3.bf16.msra.mxu1 %v356_v15  ;;  %324 = vmatprep.mubr.msk.bf16.mxu1 %vm392_vm1, %v391_v3 }
  0x8c   :  { %322 = vmatprep.subr.bf16.mxu1 %v391_v3 }
  0x8f   :  { %323 = vmatpush3.bf16.msra.mxu1 %v106_v20 }
  0x92   :  { %325 = vmatmul.mubr.msk.bf16.vlgmr.msra.gmra.mrb[4].mxu1 %vm98_vm5, %v36_v21 }
 0x15d   :  { %v83_v26 = vpop.f32.mrb[0].mxu1 }
 0x15e   :  { %v318_v27 = vpop.f32.mrb[1].mxu1 }
 0x15f   :  { %v86_v28 = vpop.f32.mrb[2].mxu1 }
 0x160   :  { %v319_v29 = vpop.f32.mrb[3].mxu1 }
 0x165   :  { %v142_v30 = vpop.f32.mrb[4].mxu1 }
 0x166   :  { %v143_v32 = vadd.f32 %v142_v30, %v83_v26  ;;  %v326_v33 = vpop.f32.mrb[5].mxu1 }
 0x167   :  { %v145_v34 = vpop.f32.mrb[6].mxu1 }
 0x168   :  { %v155_v35 = vadd.f32 %v290_v31, %v143_v32  ;;  %v327_v36 = vpop.f32.mrb[7].mxu1 }
 0x16a   :  { %v156_v37 = vmax.f32 %v155_v35, 0.0 }
 0x16c   :  { %v157_v38 = vpack.c.bf16 %v156_v37, %v156_v37 }
 0x16e   :  { %345 = vmatmul.mubr.bf16.vlgmr.msra.gmra.mrb[0].mxu0 %v157_v38 }
 0x241   :  { %v263_v40 = vpop.f32.mrb[0].mxu0 }
 0x242   :  { %v264_v41 = vadd.f32 %v291_v39, %v263_v40  ;;  %v346_v42 = vpop.f32.mrb[1].mxu0 }
 0x243   :  { %v266_v43 = vpop.f32.mrb[2].mxu0 }
 0x244   :  { %v347_v44 = vpop.f32.mrb[3].mxu0  ;;  %270 = vst.msk [vmem:[#allocation2] sm:$0xff] %vm269_vm6, %v264_v41 }
 0x245   :  { %377 = shalt.err (!%p374_p4)
}
 0x246   :  { %s378_s5 = scalar_lea.hbm %s493_s6, 128 }
 0x247   :  { %p379_p5 = scmp.ne.s32.totalorder %s493_s6, %s378_s5  ;;  %p382_p6 = scmp.lt.u32.totalorder %s378_s5, %s493_s6 }
 0x249   :  { %p384_p7 = pnand %p382_p6, %p379_p5 }
 0x24b   :  { %387 = shalt.err (!%p384_p7)
}
 0x24c   :  { %280 = dma.vmem_to_hbm [thread:$0]  %s278_s22, 128, %s493_s6, [#allocation3]  }
 0x24d   :  { %388 = dma.done.wait [#allocation3], 128  }
 0x24e   :  { %389 = vsyncadd [#allocation3], 4294967168 }
 0x24f   :  { %284 = vsyncpa [#allocation3], 1 }

</bundles_post_ra>
